<compile_context>
chip_gen: v5e
topology: v5e:2x2
jax: 0.10.0
libtpu: 0.0.40
codegen_flags: <defaults>
</compile_context>

<pallas_src>
import jax
import jax.numpy as jnp
from jax import lax
from jax.experimental import pallas as pl
from jax.experimental.pallas import tpu as pltpu


def _round_up(n, m):
    return ((n + m - 1) // m) * m


def _make_kernel(action_size: int):
    """Kernel closure capturing the (static) number of actor logits."""

    def kernel(x_ref, w1_ref, b1_ref, w2_ref, b2_ref, out_ref):
        x = x_ref[...]                                             # (TB, S) f32

        # Fused first layer: [h_a | h_c | 0pad] = relu(x @ [aw1|cw1|0] + b1).
        # bf16 in -> MXU -> f32 accumulate; bias/ReLU in f32. Full 128-lane h.
        h = jnp.dot(x.astype(jnp.bfloat16), w1_ref[...],
                    preferred_element_type=jnp.float32) + b1_ref[...]
        h = jnp.maximum(h, 0.0)                                    # (TB, 128)

        # Fused second layer (block-diagonal, zero-padded): z = [logits|value|0].
        z = jnp.dot(h.astype(jnp.bfloat16), w2_ref[...],
                    preferred_element_type=jnp.float32) + b2_ref[...]  # (TB, 128)

        # Numerically-stable softmax over the actor lanes only; the critic
        # value lane (and zero pad lanes) pass through untouched. Masked
        # full-width formulation stays lane-dense (no narrow slices/concats).
        lane = lax.broadcasted_iota(jnp.int32, z.shape, 1)
        is_logit = lane < action_size
        zl = jnp.where(is_logit, z, -jnp.inf)
        m = jnp.max(zl, axis=-1, keepdims=True)
        e = jnp.exp(zl - m)                                        # exp(-inf)=0 off-mask
        s = jnp.sum(e, axis=-1, keepdims=True)
        # EUP approximate reciprocal + one Newton step (keeps 1e-5 tolerance).
        r = pl.reciprocal(s, approx=True)
        r = r * (2.0 - s * r)
        out_ref[...] = jnp.where(is_logit, e * r, z)

    return kernel


def _choose_tiling(B, single_step_max=1024, tile_rows=512):
    """Pick (TB, B_pad). Single grid step for small batches; even grid for big."""
    B8 = _round_up(B, 8)
    if B8 <= single_step_max:
        return B8, B8
    TB = tile_rows
    B_pad = _round_up(B, TB)
    if (B_pad // TB) % 2:            # even number of tiles -> clean 2-TC split
        B_pad += TB
    return TB, B_pad


def actor_critic_forward(x, fused, *, single_step_max=1024, tile_rows=512):
    """x: (B, state_size) f32. fused: dict of padded bf16 weights / f32 biases.

    Returns (action_probs (B, A), state_value (B, 1)) in f32.
    """
    B, S = x.shape
    H2 = fused["w1"].shape[1]          # padded hidden width (128)
    Aout = fused["w2"].shape[1]        # padded output width (128)
    action_size = fused["action_size"]

    TB, B_pad = _choose_tiling(B, single_step_max, tile_rows)
    if B_pad != B:
        x = jnp.pad(x, ((0, B_pad - B), (0, 0)))
    grid = (B_pad // TB,)

    cost = pl.CostEstimate(
        flops=2 * B_pad * (S * H2 + H2 * Aout),
        transcendentals=B_pad * (action_size + 1),
        bytes_accessed=(B_pad * S * 4                      # x
                        + fused["w1"].size * 2 + fused["w2"].size * 2
                        + fused["b1"].size * 4 + fused["b2"].size * 4
                        + B_pad * Aout * 4),                # output
    )

    out = pl.pallas_call(
        _make_kernel(action_size),
        out_shape=jax.ShapeDtypeStruct((B_pad, Aout), jnp.float32),
        grid=grid,
        in_specs=[
            pl.BlockSpec((TB, S), lambda i: (i, 0)),        # x: tiled over batch
            pl.BlockSpec((S, H2), lambda i: (0, 0)),        # fused W1 (resident)
            pl.BlockSpec((1, H2), lambda i: (0, 0)),        # fused b1
            pl.BlockSpec((H2, Aout), lambda i: (0, 0)),     # fused W2 (block-diag)
            pl.BlockSpec((1, Aout), lambda i: (0, 0)),      # fused b2
        ],
        out_specs=pl.BlockSpec((TB, Aout), lambda i: (i, 0)),
        compiler_params=pltpu.CompilerParams(
            dimension_semantics=("parallel",)),             # harmless at grid=(1,)
        cost_estimate=cost,
    )(x, fused["w1"], fused["b1"], fused["w2"], fused["b2"])

    probs = out[:B, :action_size]
    value = out[:B, action_size:action_size + 1]
    return probs, value


def init_params(key, state_size, action_size, node_num):
    """Per-head params mimicking PyTorch nn.Linear init (uniform +/- 1/sqrt(fan_in)).
    Weights stored as (in_features, out_features)."""
    def linear(k, fan_in, fan_out):
        kw, kb = jax.random.split(k)
        bound = 1.0 / jnp.sqrt(jnp.float32(fan_in))
        w = jax.random.uniform(kw, (fan_in, fan_out), jnp.float32, -bound, bound)
        b = jax.random.uniform(kb, (1, fan_out), jnp.float32, -bound, bound)
        return w, b

    k1, k2, k3, k4 = jax.random.split(key, 4)
    aw1, ab1 = linear(k1, state_size, node_num)
    aw2, ab2 = linear(k2, node_num, action_size)
    cw1, cb1 = linear(k3, state_size, node_num)
    cw2, cb2 = linear(k4, node_num, 1)
    return dict(aw1=aw1, ab1=ab1, aw2=aw2, ab2=ab2,
                cw1=cw1, cb1=cb1, cw2=cw2, cb2=cb2)


def fuse_params(p):
    """Host-side fusion + lane padding.

    w1 = [aw1 | cw1 | 0]           -> (S, 128)   hidden lanes: [0:H)=actor, [H:2H)=critic
    w2 = [[aw2, 0, 0],
          [0, cw2, 0],
          [0,   0, 0]]             -> (128, 128) output lanes: [0:A)=logits, A=value, rest pad
    Matmul weights stored bf16 (MXU-native); biases stay f32. Zero padding is
    free on the MXU and keeps every vector op / store lane-dense.
    """
    S = p["aw1"].shape[0]
    H = p["aw1"].shape[1]
    A = p["aw2"].shape[1]
    H2_pad = _round_up(2 * H, 128)
    Aout_pad = _round_up(A + 1, 128)

    w1 = jnp.zeros((S, H2_pad), jnp.float32)
    w1 = w1.at[:, :H].set(p["aw1"]).at[:, H:2 * H].set(p["cw1"])
    b1 = jnp.zeros((1, H2_pad), jnp.float32)
    b1 = b1.at[:, :H].set(p["ab1"]).at[:, H:2 * H].set(p["cb1"])

    w2 = jnp.zeros((H2_pad, Aout_pad), jnp.float32)
    w2 = w2.at[:H, :A].set(p["aw2"]).at[H:2 * H, A:A + 1].set(p["cw2"])
    b2 = jnp.zeros((1, Aout_pad), jnp.float32)
    b2 = b2.at[:, :A].set(p["ab2"]).at[:, A:A + 1].set(p["cb2"])

    return dict(w1=w1.astype(jnp.bfloat16), b1=b1,
                w2=w2.astype(jnp.bfloat16), b2=b2,
                action_size=A)


def reference_forward_f32(x, p):
    """Pure-f32 PyTorch-semantic reference (unfused)."""
    h_a = jnp.maximum(x @ p["aw1"] + p["ab1"], 0.0)
    logits = h_a @ p["aw2"] + p["ab2"]
    probs = jax.nn.softmax(logits, axis=-1)
    h_c = jnp.maximum(x @ p["cw1"] + p["cb1"], 0.0)
    value = h_c @ p["cw2"] + p["cb2"]
    return probs, value


def reference_forward_fused_bf16(x, f):
    """Pure-JAX reference mirroring the kernel arithmetic (bf16 MXU inputs,
    f32 accumulate/elementwise) for a tight correctness check."""
    A = f["action_size"]
    h = jnp.maximum(
        jnp.dot(x.astype(jnp.bfloat16), f["w1"],
                preferred_element_type=jnp.float32) + f["b1"], 0.0)
    z = jnp.dot(h.astype(jnp.bfloat16), f["w2"],
                preferred_element_type=jnp.float32) + f["b2"]
    logits, value = z[:, :A], z[:, A:A + 1]
    return jax.nn.softmax(logits, axis=-1), value


def _check(x, params, fused, batch, action_size):
    probs, value = actor_critic_forward(x, fused)
    jax.block_until_ready((probs, value))

    ref_probs_bf, ref_value_bf = reference_forward_fused_bf16(x, fused)
    ref_probs_f32, ref_value_f32 = reference_forward_f32(x, params)

    assert probs.shape == (batch, action_size)
    assert value.shape == (batch, 1)
    assert jnp.allclose(probs, ref_probs_bf, atol=1e-5, rtol=1e-5)
    assert jnp.allclose(value, ref_value_bf, atol=1e-5, rtol=1e-5)
    assert jnp.allclose(probs, ref_probs_f32, atol=3e-2)
    assert jnp.allclose(value, ref_value_f32, atol=5e-2)
    assert jnp.allclose(jnp.sum(probs, axis=-1), 1.0, atol=1e-5)


if __name__ == "__main__":
    # CartPole-like sizes: state_size=4, action_size=2, hidden node_num=32.
    state_size, action_size, node_num = 4, 2, 32

    key = jax.random.PRNGKey(0)
    k_params, k_x1, k_x2 = jax.random.split(key, 3)
    params = init_params(k_params, state_size, action_size, node_num)
    fused = fuse_params(params)

    # Small batch (256): single grid step, grid=(1,).
    batch = 256
    x = jax.random.normal(k_x1, (batch, state_size), jnp.float32)
    _check(x, params, fused, batch, action_size)

    # Larger, non-multiple batch: exercises the tiled path (TB=512, even grid)
    # and batch-row padding. Still tiny data (2500 x 4 f32).
    batch_big = 2500
    x_big = jax.random.normal(k_x2, (batch_big, state_size), jnp.float32)
    _check(x_big, params, fused, batch_big, action_size)

    print("KERNEL_OK")
</pallas_src>

<mosaic_0001>
module attributes {stable_mosaic.version = 11 : i64} {
  func.func @kernel(%arg0: i32, %arg1: memref<256x4xf32, #tpu.memory_space<vmem>>, %arg2: memref<4x128xbf16, #tpu.memory_space<vmem>>, %arg3: memref<1x128xf32, #tpu.memory_space<vmem>>, %arg4: memref<128x128xbf16, #tpu.memory_space<vmem>>, %arg5: memref<1x128xf32, #tpu.memory_space<vmem>>, %arg6: memref<256x128xf32, #tpu.memory_space<vmem>>) attributes {dimension_semantics = [#tpu.dimension_semantics<parallel>], iteration_bounds = array<i64: 1>, scalar_prefetch = 0 : i64, scratch_operands = 0 : i64, tpu.core_type = #tpu.core_type<tc>, window_params = [{transform_indices = @transform_0, window_bounds = array<i64: 256, 4>}, {pipeline_mode = #tpu.pipeline_mode<synchronous>, transform_indices = @transform_1, window_bounds = array<i64: 4, 128>}, {pipeline_mode = #tpu.pipeline_mode<synchronous>, transform_indices = @transform_2, window_bounds = array<i64: 1, 128>}, {pipeline_mode = #tpu.pipeline_mode<synchronous>, transform_indices = @transform_3, window_bounds = array<i64: 128, 128>}, {pipeline_mode = #tpu.pipeline_mode<synchronous>, transform_indices = @transform_4, window_bounds = array<i64: 1, 128>}, {transform_indices = @transform_5, window_bounds = array<i64: 256, 128>}]} {
    %c0 = arith.constant 0 : index
    %c0_0 = arith.constant 0 : index
    %0 = vector.load %arg1[%c0, %c0_0] : memref<256x4xf32, #tpu.memory_space<vmem>>, vector<256x4xf32>
    %1 = arith.truncf %0 : vector<256x4xf32> to vector<256x4xbf16>
    %c0_1 = arith.constant 0 : index
    %c0_2 = arith.constant 0 : index
    %2 = vector.load %arg2[%c0_1, %c0_2] : memref<4x128xbf16, #tpu.memory_space<vmem>>, vector<4x128xbf16>
    %cst = arith.constant dense<0.000000e+00> : vector<256x128xf32>
    %3 = tpu.matmul %1, %2, %cst {dimension_numbers = #tpu.dot_dimension_numbers<[1], [0], [0], [1], [0, 0, 1, 1], [], []>} : vector<256x4xbf16>, vector<4x128xbf16>, vector<256x128xf32> -> vector<256x128xf32>
    %c0_3 = arith.constant 0 : index
    %c0_4 = arith.constant 0 : index
    %4 = vector.load %arg3[%c0_3, %c0_4] : memref<1x128xf32, #tpu.memory_space<vmem>>, vector<1x128xf32>
    %5 = vector.broadcast %4 : vector<1x128xf32> to vector<256x128xf32>
    %6 = arith.addf %3, %5 : vector<256x128xf32>
    %cst_5 = arith.constant 0.000000e+00 : f32
    %7 = vector.broadcast %cst_5 : f32 to vector<256x128xf32>
    %8 = arith.maximumf %6, %7 : vector<256x128xf32>
    %9 = arith.truncf %8 : vector<256x128xf32> to vector<256x128xbf16>
    %c0_6 = arith.constant 0 : index
    %c0_7 = arith.constant 0 : index
    %10 = vector.load %arg4[%c0_6, %c0_7] : memref<128x128xbf16, #tpu.memory_space<vmem>>, vector<128x128xbf16>
    %cst_8 = arith.constant dense<0.000000e+00> : vector<256x128xf32>
    %11 = tpu.matmul %9, %10, %cst_8 {dimension_numbers = #tpu.dot_dimension_numbers<[1], [0], [0], [1], [0, 0, 1, 1], [], []>} : vector<256x128xbf16>, vector<128x128xbf16>, vector<256x128xf32> -> vector<256x128xf32>
    %c0_9 = arith.constant 0 : index
    %c0_10 = arith.constant 0 : index
    %12 = vector.load %arg5[%c0_9, %c0_10] : memref<1x128xf32, #tpu.memory_space<vmem>>, vector<1x128xf32>
    %13 = vector.broadcast %12 : vector<1x128xf32> to vector<256x128xf32>
    %14 = arith.addf %11, %13 : vector<256x128xf32>
    %15 = tpu.iota {dimensions = array<i32: 1>} : vector<256x128xi32>
    %c2_i32 = arith.constant 2 : i32
    %16 = vector.broadcast %c2_i32 : i32 to vector<256x128xi32>
    %17 = arith.cmpi slt, %15, %16 : vector<256x128xi32>
    %cst_11 = arith.constant 0xFF800000 : f32
    %18 = vector.broadcast %cst_11 : f32 to vector<256x128xf32>
    %19 = arith.select %17, %14, %18 : vector<256x128xi1>, vector<256x128xf32>
    %cst_12 = arith.constant dense<0xFF800000> : vector<256xf32>
    %20 = vector.multi_reduction <maximumf>, %19, %cst_12 [1] : vector<256x128xf32> to vector<256xf32>
    %21 = vector.shape_cast %20 : vector<256xf32> to vector<256x1xf32>
    %22 = vector.broadcast %21 : vector<256x1xf32> to vector<256x128xf32>
    %23 = arith.subf %19, %22 : vector<256x128xf32>
    %24 = math.exp %23 : vector<256x128xf32>
    %cst_13 = arith.constant dense<0.000000e+00> : vector<256xf32>
    %25 = vector.multi_reduction <add>, %24, %cst_13 [1] : vector<256x128xf32> to vector<256xf32>
    %26 = vector.shape_cast %25 : vector<256xf32> to vector<256x1xf32>
    %27 = tpu.reciprocal %26 {approx = true} : vector<256x1xf32> -> vector<256x1xf32>
    %28 = arith.mulf %26, %27 : vector<256x1xf32>
    %cst_14 = arith.constant 2.000000e+00 : f32
    %29 = vector.broadcast %cst_14 : f32 to vector<256x1xf32>
    %30 = arith.subf %29, %28 : vector<256x1xf32>
    %31 = arith.mulf %27, %30 : vector<256x1xf32>
    %32 = vector.broadcast %31 : vector<256x1xf32> to vector<256x128xf32>
    %33 = arith.mulf %24, %32 : vector<256x128xf32>
    %34 = arith.select %17, %33, %14 : vector<256x128xi1>, vector<256x128xf32>
    %c0_15 = arith.constant 0 : index
    %c0_16 = arith.constant 0 : index
    %35 = vector.load %arg6[%c0_15, %c0_16] : memref<256x128xf32, #tpu.memory_space<vmem>>, vector<256x128xf32>
    tpu.vector_store %arg6[%c0_15, %c0_16], %34 {strides = array<i32>} : memref<256x128xf32, #tpu.memory_space<vmem>>, vector<256x128xf32>,
    return
  }
  func.func @transform_0(%arg0: i32) -> (i32, i32) {
    %c0_i32 = arith.constant 0 : i32
    %c0_i32_0 = arith.constant 0 : i32
    return %arg0, %c0_i32 : i32, i32
  }
  func.func @transform_1(%arg0: i32) -> (i32, i32) {
    %c0_i32 = arith.constant 0 : i32
    %c0_i32_0 = arith.constant 0 : i32
    %c0_i32_1 = arith.constant 0 : i32
    return %c0_i32, %c0_i32_0 : i32, i32
  }
  func.func @transform_2(%arg0: i32) -> (i32, i32) {
    %c0_i32 = arith.constant 0 : i32
    %c0_i32_0 = arith.constant 0 : i32
    %c0_i32_1 = arith.constant 0 : i32
    return %c0_i32, %c0_i32_0 : i32, i32
  }
  func.func @transform_3(%arg0: i32) -> (i32, i32) {
    %c0_i32 = arith.constant 0 : i32
    %c0_i32_0 = arith.constant 0 : i32
    %c0_i32_1 = arith.constant 0 : i32
    return %c0_i32, %c0_i32_0 : i32, i32
  }
  func.func @transform_4(%arg0: i32) -> (i32, i32) {
    %c0_i32 = arith.constant 0 : i32
    %c0_i32_0 = arith.constant 0 : i32
    %c0_i32_1 = arith.constant 0 : i32
    return %c0_i32, %c0_i32_0 : i32, i32
  }
  func.func @transform_5(%arg0: i32) -> (i32, i32) {
    %c0_i32 = arith.constant 0 : i32
    %c0_i32_0 = arith.constant 0 : i32
    return %arg0, %c0_i32 : i32, i32
  }
}

</mosaic_0001>

<bundles_post_ra>
// kernel: tpu_custom_call.1
= control target key start
LH: loop header
LB: loop body
LE: loop exit
PB: predicated region body
PF: predicated region fallthrough
CT: control target
= control target key end

     0   :  { %vm124_vm0 = vcmask 1041408   ;;  %vm75_vm1 = vcmask 31744   ;;  %s1911_s0 = inlined_call_operand.vmem [shape: f32[256,4], index: 0, kind: input, shape index: {}]   ;;  %s1912_s1 = inlined_call_operand.vmem [shape: bf16[4,128], index: 1, kind: input, shape index: {}]   ;;  %s1913_s2 = inlined_call_operand.vmem [shape: f32[1,128], index: 2, kind: input, shape index: {}]   ;;  %s1914_s3 = inlined_call_operand.vmem [shape: bf16[128,128], index: 3, kind: input, shape index: {}]   ;;  %s1915_s4 = inlined_call_operand.vmem [shape: f32[1,128], index: 4, kind: input, shape index: {}]   ;;  %s1916_s5 = inlined_call_operand.hbm [shape: f32[256,128], index: 5, kind: output, shape index: {}]  }
   0x1   :  { %v70_v0 = vld [vmem:[%s1912_s1] sm:$0x3]  ;;  %v23_v2 = vld [vmem:[%s1911_s0 + $0x8] sm:$0xff] }
   0x2   :  { %v22_v1 = vld [vmem:[%s1911_s0] sm:$0xff]  ;;  %v126_v3 = vsel %vm124_vm0, %v70_v0, 0 }
   0x3   :  { %v54_v4 = vpack.c.bf16 %v23_v2, %v22_v1  ;;  %135 = vmatpush.bf16.msra.mxu0 %v126_v3  ;;  %979 = vmatpush.bf16.msra.mxu3 %v126_v3 }
   0x4   :  { %10 = vsyncpa [#allocation3], 0  ;;  %v24_v5 = vld [vmem:[%s1911_s0 + $0x10] sm:$0xff]  ;;  %v25_v6 = vld [vmem:[%s1911_s0 + $0x18] sm:$0xff]  ;;  %s911_s25 = sshll.u32 %s1916_s5, 4  ;;  %s1148_s1 = smov 128   ;;  %s912_s25 = int_to_ptr.hbm [resolvable:$true] %s911_s25 }
   0x5   :  { %v55_v7 = vpack.c.bf16 %v25_v6, %v24_v5  ;;  %v26_v8 = vld [vmem:[%s1911_s0 + $0x20] sm:$0xff]  ;;  %v27_v9 = vld [vmem:[%s1911_s0 + $0x28] sm:$0xff]  ;;  %v28_v11 = vld [vmem:[%s1911_s0 + $0x30] sm:$0xff]  ;;  %s1149_s26 = smov 8  }
   0x6   :  { %923 = vmatmul.msk.bf16.vlgmr.msra.gmra.mxu0 %vm75_vm1, %v54_v4  ;;  %v56_v10 = vpack.c.bf16 %v27_v9, %v26_v8  ;;  %v29_v12 = vld [vmem:[%s1911_s0 + $0x38] sm:$0xff]  ;;  %v30_v14 = vld [vmem:[%s1911_s0 + $0x40] sm:$0xff]  ;;  %v31_v15 = vld [vmem:[%s1911_s0 + $0x48] sm:$0xff] }
   0x7   :  { %v57_v13 = vpack.c.bf16 %v29_v12, %v28_v11  ;;  %v58_v16 = vpack.c.bf16 %v31_v15, %v30_v14  ;;  %v978_v17 = vld [vmem:[%s1914_s3 + $0x38] sm:$0xff]  ;;  %v32_v18 = vld [vmem:[%s1911_s0 + $0x50] sm:$0xff]  ;;  %v976_v22 = vld [vmem:[%s1914_s3 + $0x28] sm:$0xff] }
   0x8   :  { %333 = vmatpush.bf16.msra.mxu1 %v978_v17  ;;  %980 = vmatpush.bf16.msra.mxu2 %v978_v17  ;;  %v33_v19 = vld [vmem:[%s1911_s0 + $0x58] sm:$0xff]  ;;  %v977_v21 = vld [vmem:[%s1914_s3 + $0x30] sm:$0xff]  ;;  %v975_v23 = vld [vmem:[%s1914_s3 + $0x20] sm:$0xff] }
   0x9   :  { %v59_v20 = vpack.c.bf16 %v33_v19, %v32_v18  ;;  %v34_v24 = vld [vmem:[%s1911_s0 + $0x60] sm:$0xff]  ;;  %v35_v25 = vld [vmem:[%s1911_s0 + $0x68] sm:$0xff]  ;;  %v974_v26 = vld [vmem:[%s1914_s3 + $0x18] sm:$0xff] }
   0xa   :  { %v60_v27 = vpack.c.bf16 %v35_v25, %v34_v24  ;;  %v973_v28 = vld [vmem:[%s1914_s3 + $0x10] sm:$0xff]  ;;  %v41_v30 = vld [vmem:[%s1911_s0 + $0x98] sm:$0xff]  ;;  %v972_v32 = vld [vmem:[%s1914_s3 + $0x8] sm:$0xff] }
   0xb   :  { %v40_v29 = vld [vmem:[%s1911_s0 + $0x90] sm:$0xff]  ;;  %v971_v33 = vld [vmem:[%s1914_s3] sm:$0xff]  ;;  %v37_v35 = vld [vmem:[%s1911_s0 + $0x78] sm:$0xff] }
   0xc   :  { %334 = vmatpush.bf16.msra.mxu1 %v977_v21  ;;  %981 = vmatpush.bf16.msra.mxu2 %v977_v21  ;;  %v63_v31 = vpack.c.bf16 %v41_v30, %v40_v29  ;;  %v36_v34 = vld [vmem:[%s1911_s0 + $0x70] sm:$0xff]  ;;  %v42_v37 = vld [vmem:[%s1911_s0 + $0xa0] sm:$0xff]  ;;  %v43_v38 = vld [vmem:[%s1911_s0 + $0xa8] sm:$0xff] }
   0xd   :  { %v61_v36 = vpack.c.bf16 %v37_v35, %v36_v34  ;;  %v64_v39 = vpack.c.bf16 %v43_v38, %v42_v37  ;;  %v38_v40 = vld [vmem:[%s1911_s0 + $0x80] sm:$0xff]  ;;  %v39_v41 = vld [vmem:[%s1911_s0 + $0x88] sm:$0xff]  ;;  %v44_v44 = vld [vmem:[%s1911_s0 + $0xb0] sm:$0xff] }
   0xe   :  { %932 = vmatmul.msk.bf16.vlgmr.msra.gmra.mxu3 %vm75_vm1, %v63_v31  ;;  %v62_v42 = vpack.c.bf16 %v39_v41, %v38_v40  ;;  %v45_v45 = vld [vmem:[%s1911_s0 + $0xb8] sm:$0xff]  ;;  %v1292_v46 = vld [vmem:[%s1913_s2] ss:$0 sm:$0xff]  ;;  %v47_v56 = vld [vmem:[%s1911_s0 + $0xc8] sm:$0xff] }
   0xf   :  { %v65_v47 = vpack.c.bf16 %v45_v45, %v44_v44  ;;  %v46_v55 = vld [vmem:[%s1911_s0 + $0xc0] sm:$0xff]  ;;  %v48_v1 = vld [vmem:[%s1911_s0 + $0xd0] sm:$0xff]  ;;  %v49_v2 = vld [vmem:[%s1911_s0 + $0xd8] sm:$0xff] }
  0x10   :  { %335 = vmatpush.bf16.msra.mxu1 %v976_v22  ;;  %982 = vmatpush.bf16.msra.mxu2 %v976_v22  ;;  %v66_v57 = vpack.c.bf16 %v47_v56, %v46_v55  ;;  %v67_v3 = vpack.c.bf16 %v49_v2, %v48_v1  ;;  %v50_v11 = vld [vmem:[%s1911_s0 + $0xe0] sm:$0xff]  ;;  %v51_v12 = vld [vmem:[%s1911_s0 + $0xe8] sm:$0xff]  ;;  %v52_v21 = vld [vmem:[%s1911_s0 + $0xf0] sm:$0xff]  ;;  %v422_v55 = vlaneseq }
  0x11   :  { %v53_v22 = vld [vmem:[%s1911_s0 + $0xf8] sm:$0xff] }
  0x14   :  { %336 = vmatpush.bf16.msra.mxu1 %v975_v23  ;;  %983 = vmatpush.bf16.msra.mxu2 %v975_v23  ;;  %v69_v23 = vpack.c.bf16 %v53_v22, %v52_v21 }
  0x16   :  { %924 = vmatmul.msk.bf16.gmra.mxu0 %vm75_vm1, %v55_v7 }
  0x18   :  { %337 = vmatpush.bf16.msra.mxu1 %v974_v26  ;;  %984 = vmatpush.bf16.msra.mxu2 %v974_v26 }
  0x1c   :  { %338 = vmatpush.bf16.msra.mxu1 %v973_v28  ;;  %985 = vmatpush.bf16.msra.mxu2 %v973_v28 }
  0x1e   :  { %933 = vmatmul.msk.bf16.gmra.mxu3 %vm75_vm1, %v64_v39 }
  0x20   :  { %339 = vmatpush.bf16.msra.mxu1 %v972_v32  ;;  %986 = vmatpush.bf16.msra.mxu2 %v972_v32 }
  0x24   :  { %340 = vmatpush.bf16.msra.mxu1 %v971_v33  ;;  %987 = vmatpush.bf16.msra.mxu2 %v971_v33 }
  0x26   :  { %925 = vmatmul.msk.bf16.gmra.mxu0 %vm75_vm1, %v56_v10 }
  0x2e   :  { %934 = vmatmul.msk.bf16.gmra.mxu3 %vm75_vm1, %v65_v47 }
  0x36   :  { %926 = vmatmul.msk.bf16.gmra.mxu0 %vm75_vm1, %v57_v13  ;;  %v68_v13 = vpack.c.bf16 %v51_v12, %v50_v11 }
  0x3e   :  { %935 = vmatmul.msk.bf16.gmra.mxu3 %vm75_vm1, %v66_v57 }
  0x46   :  { %927 = vmatmul.msk.bf16.gmra.mxu0 %vm75_vm1, %v58_v16 }
  0x4e   :  { %936 = vmatmul.msk.bf16.gmra.mxu3 %vm75_vm1, %v67_v3 }
  0x56   :  { %928 = vmatmul.msk.bf16.gmra.mxu0 %vm75_vm1, %v59_v20 }
  0x5e   :  { %937 = vmatmul.msk.bf16.gmra.mxu3 %vm75_vm1, %v68_v13 }
  0x66   :  { %929 = vmatmul.msk.bf16.gmra.mxu0 %vm75_vm1, %v60_v27 }
  0x6e   :  { %938 = vmatmul.msk.bf16.gmra.mxu3 %vm75_vm1, %v69_v23 }
  0x76   :  { %930 = vmatmul.msk.bf16.gmra.mxu0 %vm75_vm1, %v61_v36 }
  0x83   :  { %v137_v43 = vpop.f32.mrf.mxu0 }
  0x84   :  { %v138_v48 = vadd.f32 %v1292_v46, %v137_v43 }
  0x86   :  { %931 = vmatmul.msk.bf16.gmra.mxu0 %vm75_vm1, %v62_v42  ;;  %v217_v51 = vmax.f32 %v138_v48, 0.0 }
  0x8b   :  { %v139_v49 = vpop.f32.mrf.mxu0 }
  0x8c   :  { %v140_v50 = vadd.f32 %v1292_v46, %v139_v49 }
  0x8e   :  { %v218_v52 = vmax.f32 %v140_v50, 0.0 }
  0x90   :  { %v249_v53 = vpack.c.bf16 %v218_v52, %v217_v51 }
  0x91   :  { %v182_v45 = vpop.f32.mrf.mxu3 }
  0x92   :  { %341 = vmatmul.bf16.vlgmr.msra.gmra.mxu1 %v249_v53 }
  0x93   :  { %v142_v54 = vpop.f32.mrf.mxu0 }
  0x94   :  { %v143_v58 = vadd.f32 %v1292_v46, %v142_v54 }
  0x96   :  { %v219_v61 = vmax.f32 %v143_v58, 0.0 }
  0x99   :  { %v184_v50 = vpop.f32.mrf.mxu3 }
  0x9b   :  { %v144_v59 = vpop.f32.mrf.mxu0 }
  0x9c   :  { %v145_v60 = vadd.f32 %v1292_v46, %v144_v59  ;;  %v1341_v59 = vand.u32 127, %v422_v55 }
  0x9e   :  { %v220_v62 = vmax.f32 %v145_v60, 0.0  ;;  %vm424_vm2 = vcmp.lt.s32.totalorder %v1341_v59, 2 }
  0xa0   :  { %v250_v63 = vpack.c.bf16 %v220_v62, %v219_v61  ;;  %v1347_v61 = vld [vmem:[%s1915_s4] ss:$0 sm:$0xff]  ;;  %s1147_s4 = smov [#allocation2]  }
  0xa1   :  { %v187_v56 = vpop.f32.mrf.mxu3  ;;  %s909_s23 = sshll.u32 %s1147_s4, 4  ;;  %s910_s23 = int_to_ptr.vmem [resolvable:$true] %s909_s23 }
  0xa2   :  { %346 = vmatmul.bf16.gmra.mxu1 %v250_v63 }
  0xa3   :  { %v147_v0 = vpop.f32.mrf.mxu0 }
  0xa4   :  { %v148_v4 = vadd.f32 %v1292_v46, %v147_v0 }
  0xa6   :  { %v221_v7 = vmax.f32 %v148_v4, 0.0 }
  0xa9   :  { %v189_v3 = vpop.f32.mrf.mxu3 }
  0xab   :  { %v149_v5 = vpop.f32.mrf.mxu0 }
  0xac   :  { %v150_v6 = vadd.f32 %v1292_v46, %v149_v5 }
  0xae   :  { %v222_v8 = vmax.f32 %v150_v6, 0.0  ;;  %v183_v6 = vadd.f32 %v1292_v46, %v182_v45 }
  0xb0   :  { %v251_v9 = vpack.c.bf16 %v222_v8, %v221_v7  ;;  %v185_v7 = vadd.f32 %v1292_v46, %v184_v50  ;;  %v235_v11 = vmax.f32 %v183_v6, 0.0 }
  0xb2   :  { %351 = vmatmul.bf16.gmra.mxu1 %v251_v9  ;;  %v236_v12 = vmax.f32 %v185_v7, 0.0 }
  0xb3   :  { %v152_v10 = vpop.f32.mrf.mxu0 }
  0xb4   :  { %v153_v14 = vadd.f32 %v1292_v46, %v152_v10  ;;  %v192_v10 = vpop.f32.mrf.mxu3 }
  0xb6   :  { %v223_v17 = vmax.f32 %v153_v14, 0.0 }
  0xbb   :  { %v154_v15 = vpop.f32.mrf.mxu0 }
  0xbc   :  { %v155_v16 = vadd.f32 %v1292_v46, %v154_v15  ;;  %v258_v15 = vpack.c.bf16 %v236_v12, %v235_v11 }
  0xbe   :  { %v224_v18 = vmax.f32 %v155_v16, 0.0 }
  0xc0   :  { %v252_v19 = vpack.c.bf16 %v224_v18, %v223_v17  ;;  %v194_v17 = vpop.f32.mrf.mxu3 }
  0xc2   :  { %356 = vmatmul.bf16.gmra.mxu1 %v252_v19  ;;  %v188_v19 = vadd.f32 %v1292_v46, %v187_v56 }
  0xc3   :  { %v157_v20 = vpop.f32.mrf.mxu0 }
  0xc4   :  { %v158_v24 = vadd.f32 %v1292_v46, %v157_v20  ;;  %v190_v20 = vadd.f32 %v1292_v46, %v189_v3  ;;  %v237_v23 = vmax.f32 %v188_v19, 0.0 }
  0xc6   :  { %v225_v27 = vmax.f32 %v158_v24, 0.0  ;;  %v238_v24 = vmax.f32 %v190_v20, 0.0 }
  0xcb   :  { %v159_v25 = vpop.f32.mrf.mxu0 }
  0xcc   :  { %v160_v26 = vadd.f32 %v1292_v46, %v159_v25 }
  0xce   :  { %v226_v28 = vmax.f32 %v160_v26, 0.0  ;;  %v197_v26 = vpop.f32.mrf.mxu3 }
  0xd0   :  { %v253_v29 = vpack.c.bf16 %v226_v28, %v225_v27  ;;  %v259_v28 = vpack.c.bf16 %v238_v24, %v237_v23 }
  0xd2   :  { %361 = vmatmul.bf16.gmra.mxu1 %v253_v29 }
  0xd3   :  { %v162_v30 = vpop.f32.mrf.mxu0 }
  0xd4   :  { %v163_v31 = vadd.f32 %v1292_v46, %v162_v30 }
  0xd6   :  { %v227_v34 = vmax.f32 %v163_v31, 0.0  ;;  %v193_v31 = vadd.f32 %v1292_v46, %v192_v10 }
  0xdb   :  { %v164_v32 = vpop.f32.mrf.mxu0 }
  0xdc   :  { %v165_v33 = vadd.f32 %v1292_v46, %v164_v32  ;;  %v195_v32 = vadd.f32 %v1292_v46, %v194_v17 }
  0xde   :  { %v228_v35 = vmax.f32 %v165_v33, 0.0 }
  0xe0   :  { %v254_v36 = vpack.c.bf16 %v228_v35, %v227_v34  ;;  %v199_v34 = vpop.f32.mrf.mxu3 }
  0xe1   :  { %v200_v45 = vadd.f32 %v1292_v46, %v199_v34 }
  0xe2   :  { %366 = vmatmul.bf16.gmra.mxu1 %v254_v36  ;;  %v239_v36 = vmax.f32 %v193_v31, 0.0 }
  0xe3   :  { %v167_v37 = vpop.f32.mrf.mxu0  ;;  %v242_v50 = vmax.f32 %v200_v45, 0.0 }
  0xe4   :  { %v168_v38 = vadd.f32 %v1292_v46, %v167_v37  ;;  %v240_v37 = vmax.f32 %v195_v32, 0.0 }
  0xe6   :  { %v229_v41 = vmax.f32 %v168_v38, 0.0 }
  0xeb   :  { %v169_v39 = vpop.f32.mrf.mxu0 }
  0xec   :  { %v170_v40 = vadd.f32 %v1292_v46, %v169_v39 }
  0xee   :  { %v230_v42 = vmax.f32 %v170_v40, 0.0  ;;  %v260_v40 = vpack.c.bf16 %v240_v37, %v239_v36 }
  0xf0   :  { %v255_v43 = vpack.c.bf16 %v230_v42, %v229_v41  ;;  %v202_v42 = vpop.f32.mrf.mxu3 }
  0xf2   :  { %371 = vmatmul.bf16.gmra.mxu1 %v255_v43 }
  0xf3   :  { %v172_v44 = vpop.f32.mrf.mxu0 }
  0xf4   :  { %v173_v47 = vadd.f32 %v1292_v46, %v172_v44  ;;  %v198_v44 = vadd.f32 %v1292_v46, %v197_v26 }
  0xf6   :  { %v231_v51 = vmax.f32 %v173_v47, 0.0 }
  0xfb   :  { %v174_v48 = vpop.f32.mrf.mxu0 }
  0xfc   :  { %v175_v49 = vadd.f32 %v1292_v46, %v174_v48 }
  0xfe   :  { %v232_v52 = vmax.f32 %v175_v49, 0.0  ;;  %v241_v49 = vmax.f32 %v198_v44, 0.0 }
 0x100   :  { %v256_v53 = vpack.c.bf16 %v232_v52, %v231_v51  ;;  %v204_v51 = vpop.f32.mrf.mxu3 }
 0x102   :  { %376 = vmatmul.bf16.gmra.mxu1 %v256_v53 }
 0x103   :  { %v177_v54 = vpop.f32.mrf.mxu0 }
 0x104   :  { %v178_v57 = vadd.f32 %v1292_v46, %v177_v54  ;;  %v261_v54 = vpack.c.bf16 %v242_v50, %v241_v49 }
 0x106   :  { %v233_v62 = vmax.f32 %v178_v57, 0.0 }
 0x108   :  { %v207_v57 = vpop.f32.mrf.mxu3 }
 0x109   :  { %v208_v12 = vadd.f32 %v1292_v46, %v207_v57 }
 0x10b   :  { %v179_v58 = vpop.f32.mrf.mxu0  ;;  %v245_v19 = vmax.f32 %v208_v12, 0.0 }
 0x10c   :  { %v180_v60 = vadd.f32 %v1292_v46, %v179_v58  ;;  %v203_v58 = vadd.f32 %v1292_v46, %v202_v42 }
 0x10e   :  { %v234_v63 = vmax.f32 %v180_v60, 0.0  ;;  %v205_v60 = vadd.f32 %v1292_v46, %v204_v51 }
 0x10f   :  { %v342_v0 = vpop.f32.mrf.mxu1 }
 0x110   :  { %v1351_v1 = vadd.f32 %v1347_v61, %v342_v0  ;;  %v257_v2 = vpack.c.bf16 %v234_v63, %v233_v62  ;;  %v243_v0 = vmax.f32 %v203_v58, 0.0  ;;  %v209_v7 = vpop.f32.mrf.mxu3 }
 0x112   :  { %381 = vmatmul.bf16.vlgmr.msra.gmra.mxu2 %v257_v2  ;;  %v1356_v4 = vsel %vm424_vm2, %v1351_v1, -inf  ;;  %v244_v2 = vmax.f32 %v205_v60, 0.0 }
 0x113   :  { %457 = vmax.xlane.f32.xlu0 %v1356_v4 }
 0x114   :  { %v262_v6 = vpack.c.bf16 %v244_v2, %v243_v0 }
 0x117   :  { %v344_v5 = vpop.f32.mrf.mxu1 }
 0x118   :  { %v1362_v8 = vadd.f32 %v1347_v61, %v344_v5 }
 0x11a   :  { %v1367_v9 = vsel %vm424_vm2, %v1362_v8, -inf }
 0x11b   :  { %459 = vmax.xlane.f32.xlu0 %v1367_v9 }
 0x11f   :  { %v347_v13 = vpop.f32.mrf.mxu1 }
 0x120   :  { %v1371_v14 = vadd.f32 %v1347_v61, %v347_v13  ;;  %v210_v13 = vadd.f32 %v1292_v46, %v209_v7 }
 0x122   :  { %386 = vmatmul.bf16.gmra.mxu2 %v258_v15  ;;  %v1376_v16 = vsel %vm424_vm2, %v1371_v14, -inf  ;;  %v246_v20 = vmax.f32 %v210_v13, 0.0 }
 0x123   :  { %461 = vmax.xlane.f32.xlu1 %v1376_v16 }
 0x127   :  { %v349_v18 = vpop.f32.mrf.mxu1 }
 0x128   :  { %v1382_v21 = vadd.f32 %v1347_v61, %v349_v18  ;;  %v212_v18 = vpop.f32.mrf.mxu3 }
 0x129   :  { %v213_v31 = vadd.f32 %v1292_v46, %v212_v18 }
 0x12a   :  { %v1387_v22 = vsel %vm424_vm2, %v1382_v21, -inf }
 0x12b   :  { %463 = vmax.xlane.f32.xlu1 %v1387_v22  ;;  %v247_v37 = vmax.f32 %v213_v31, 0.0 }
 0x12f   :  { %v352_v25 = vpop.f32.mrf.mxu1 }
 0x130   :  { %v1391_v27 = vadd.f32 %v1347_v61, %v352_v25  ;;  %v263_v25 = vpack.c.bf16 %v246_v20, %v245_v19 }
 0x132   :  { %391 = vmatmul.bf16.gmra.mxu2 %v259_v28  ;;  %v1396_v29 = vsel %vm424_vm2, %v1391_v27, -inf  ;;  %v214_v28 = vpop.f32.mrf.mxu3 }
 0x133   :  { %465 = vmax.xlane.f32.xlu2 %v1396_v29  ;;  %v215_v32 = vadd.f32 %v1292_v46, %v214_v28 }
 0x137   :  { %v354_v30 = vpop.f32.mrf.mxu1 }
 0x138   :  { %v1402_v33 = vadd.f32 %v1347_v61, %v354_v30 }
 0x13a   :  { %v1407_v35 = vsel %vm424_vm2, %v1402_v33, -inf }
 0x13b   :  { %467 = vmax.xlane.f32.xlu2 %v1407_v35 }
 0x13f   :  { %v357_v38 = vpop.f32.mrf.mxu1 }
 0x140   :  { %v1411_v39 = vadd.f32 %v1347_v61, %v357_v38  ;;  %v248_v38 = vmax.f32 %v215_v32, 0.0 }
 0x142   :  { %396 = vmatmul.bf16.gmra.mxu2 %v260_v40  ;;  %v1416_v41 = vsel %vm424_vm2, %v1411_v39, -inf }
 0x143   :  { %469 = vmax.xlane.f32.xlu0 %v1416_v41 }
 0x147   :  { %v359_v43 = vpop.f32.mrf.mxu1 }
 0x148   :  { %v1422_v47 = vadd.f32 %v1347_v61, %v359_v43  ;;  %v264_v43 = vpack.c.bf16 %v248_v38, %v247_v37 }
 0x14a   :  { %v1427_v48 = vsel %vm424_vm2, %v1422_v47, -inf }
 0x14b   :  { %471 = vmax.xlane.f32.xlu1 %v1427_v48 }
 0x14f   :  { %v362_v52 = vpop.f32.mrf.mxu1 }
 0x150   :  { %v1431_v53 = vadd.f32 %v1347_v61, %v362_v52 }
 0x152   :  { %401 = vmatmul.bf16.gmra.mxu2 %v261_v54  ;;  %v1436_v55 = vsel %vm424_vm2, %v1431_v53, -inf }
 0x153   :  { %473 = vmax.xlane.f32.xlu2 %v1436_v55 }
 0x157   :  { %v364_v56 = vpop.f32.mrf.mxu1 }
 0x158   :  { %v1442_v62 = vadd.f32 %v1347_v61, %v364_v56 }
 0x15a   :  { %v1447_v63 = vsel %vm424_vm2, %v1442_v62, -inf }
 0x15b   :  { %475 = vmax.xlane.f32.xlu0 %v1447_v63 }
 0x15f   :  { %v367_v3 = vpop.f32.mrf.mxu1 }
 0x160   :  { %v1451_v5 = vadd.f32 %v1347_v61, %v367_v3 }
 0x162   :  { %406 = vmatmul.bf16.gmra.mxu2 %v262_v6  ;;  %v1456_v10 = vsel %vm424_vm2, %v1451_v5, -inf }
 0x163   :  { %477 = vmax.xlane.f32.xlu1 %v1456_v10 }
 0x167   :  { %v369_v11 = vpop.f32.mrf.mxu1 }
 0x168   :  { %v1462_v15 = vadd.f32 %v1347_v61, %v369_v11 }
 0x16a   :  { %v1467_v17 = vsel %vm424_vm2, %v1462_v15, -inf }
 0x16b   :  { %479 = vmax.xlane.f32.xlu2 %v1467_v17 }
 0x16f   :  { %v372_v23 = vpop.f32.mrf.mxu1 }
 0x170   :  { %v1471_v24 = vadd.f32 %v1347_v61, %v372_v23 }
 0x172   :  { %411 = vmatmul.bf16.gmra.mxu2 %v263_v25  ;;  %v1476_v26 = vsel %vm424_vm2, %v1471_v24, -inf }
 0x173   :  { %481 = vmax.xlane.f32.xlu0 %v1476_v26 }
 0x177   :  { %v374_v30 = vpop.f32.mrf.mxu1 }
 0x178   :  { %v1482_v34 = vadd.f32 %v1347_v61, %v374_v30 }
 0x17a   :  { %v1487_v36 = vsel %vm424_vm2, %v1482_v34, -inf }
 0x17b   :  { %483 = vmax.xlane.f32.xlu1 %v1487_v36 }
 0x17f   :  { %v377_v40 = vpop.f32.mrf.mxu1 }
 0x180   :  { %v1491_v42 = vadd.f32 %v1347_v61, %v377_v40 }
 0x182   :  { %1932 = vst [vmem:[#allocation5_spill] sm:$0xff] %v1491_v42  ;;  %416 = vmatmul.bf16.gmra.mxu2 %v264_v43  ;;  %v1496_v46 = vsel %vm424_vm2, %v1491_v42, -inf }
 0x183   :  { %485 = vmax.xlane.f32.xlu2 %v1496_v46 }
 0x186   :  { %v458_v44 = vpop.xlane.xlu0 %457 }
 0x187   :  { %v521_v45 = vsub.f32 %v1356_v4, %v458_v44  ;;  %v379_v49 = vpop.f32.mrf.mxu1 }
 0x188   :  { %v1501_v50 = vadd.f32 %v1347_v61, %v379_v49 }
 0x189   :  { %v553_v51 = vmul.f32 1.442695, %v521_v45 }
 0x18a   :  { %v1506_v52 = vsel %vm424_vm2, %v1501_v50, -inf }
 0x18b   :  { %993 = vpow2.f32 %v553_v51  ;;  %487 = vmax.xlane.f32.xlu0 %v1506_v52 }
 0x18e   :  { %v460_v54 = vpop.xlane.xlu0 %459 }
 0x18f   :  { %v522_v56 = vsub.f32 %v1367_v9, %v460_v54 }
 0x191   :  { %v1510_v57 = vpop.eup %993  ;;  %v555_v58 = vmul.f32 1.442695, %v522_v56 }
 0x192   :  { %617 = vadd.xlane.f32.xlu2 %v1510_v57 }
 0x193   :  { %995 = vpow2.f32 %v555_v58 }
 0x195   :  { %v382_v4 = vpop.f32.mrf.mxu2 }
 0x196   :  { %v1514_v60 = vadd.f32 %v1347_v61, %v382_v4  ;;  %v462_v0 = vpop.xlane.xlu1 %461 }
 0x197   :  { %v523_v2 = vsub.f32 %v1376_v16, %v462_v0 }
 0x198   :  { %v1520_v3 = vsel %vm424_vm2, %v1514_v60, -inf }
 0x199   :  { %v1522_v6 = vpop.eup %995  ;;  %v557_v9 = vmul.f32 1.442695, %v523_v2  ;;  %489 = vmax.xlane.f32.xlu1 %v1520_v3 }
 0x19a   :  { %619 = vadd.xlane.f32.xlu0 %v1522_v6 }
 0x19b   :  { %997 = vpow2.f32 %v557_v9 }
 0x19d   :  { %v384_v7 = vpop.f32.mrf.mxu2 }
 0x19e   :  { %v1527_v11 = vadd.f32 %v1347_v61, %v384_v7  ;;  %v464_v12 = vpop.xlane.xlu1 %463 }
 0x19f   :  { %v524_v16 = vsub.f32 %v1387_v22, %v464_v12 }
 0x1a0   :  { %1933 = vst [vmem:[#allocation6_spill] sm:$0xff] %v1527_v11  ;;  %v1533_v13 = vsel %vm424_vm2, %v1527_v11, -inf }
 0x1a1   :  { %v1535_v18 = vpop.eup %997  ;;  %v559_v19 = vmul.f32 1.442695, %v524_v16  ;;  %491 = vmax.xlane.f32.xlu2 %v1533_v13 }
 0x1a2   :  { %621 = vadd.xlane.f32.xlu1 %v1535_v18 }
 0x1a3   :  { %999 = vpow2.f32 %v559_v19 }
 0x1a5   :  { %v387_v20 = vpop.f32.mrf.mxu2 }
 0x1a6   :  { %v1540_v23 = vadd.f32 %v1347_v61, %v387_v20  ;;  %v466_v25 = vpop.xlane.xlu2 %465 }
 0x1a7   :  { %v525_v22 = vsub.f32 %v1396_v29, %v466_v25 }
 0x1a8   :  { %1934 = vst [vmem:[#allocation7_spill] sm:$0xff] %v1540_v23  ;;  %v1546_v28 = vsel %vm424_vm2, %v1540_v23, -inf }
 0x1a9   :  { %v1548_v30 = vpop.eup %999  ;;  %v561_v31 = vmul.f32 1.442695, %v525_v22  ;;  %493 = vmax.xlane.f32.xlu0 %v1546_v28 }
 0x1aa   :  { %623 = vadd.xlane.f32.xlu2 %v1548_v30 }
 0x1ab   :  { %1001 = vpow2.f32 %v561_v31 }
 0x1ad   :  { %v389_v32 = vpop.f32.mrf.mxu2 }
 0x1ae   :  { %v1553_v37 = vadd.f32 %v1347_v61, %v389_v32  ;;  %v468_v38 = vpop.xlane.xlu2 %467 }
 0x1af   :  { %v526_v29 = vsub.f32 %v1407_v35, %v468_v38 }
 0x1b0   :  { %1935 = vst [vmem:[#allocation8_spill] sm:$0xff] %v1553_v37  ;;  %v1559_v40 = vsel %vm424_vm2, %v1553_v37, -inf }
 0x1b1   :  { %v1561_v43 = vpop.eup %1001  ;;  %v563_v44 = vmul.f32 1.442695, %v526_v29  ;;  %495 = vmax.xlane.f32.xlu1 %v1559_v40 }
 0x1b2   :  { %625 = vadd.xlane.f32.xlu0 %v1561_v43 }
 0x1b3   :  { %1003 = vpow2.f32 %v563_v44 }
 0x1b5   :  { %v392_v45 = vpop.f32.mrf.mxu2 }
 0x1b6   :  { %v1566_v49 = vadd.f32 %v1347_v61, %v392_v45  ;;  %v470_v51 = vpop.xlane.xlu0 %469 }
 0x1b7   :  { %v527_v35 = vsub.f32 %v1416_v41, %v470_v51 }
 0x1b8   :  { %1936 = vst [vmem:[#allocation9_spill] sm:$0xff] %v1566_v49  ;;  %v1572_v54 = vsel %vm424_vm2, %v1566_v49, -inf }
 0x1b9   :  { %v1574_v56 = vpop.eup %1003  ;;  %v565_v58 = vmul.f32 1.442695, %v527_v35  ;;  %497 = vmax.xlane.f32.xlu2 %v1572_v54 }
 0x1ba   :  { %627 = vadd.xlane.f32.xlu1 %v1574_v56 }
 0x1bb   :  { %1005 = vpow2.f32 %v565_v58 }
 0x1bd   :  { %v394_v4 = vpop.f32.mrf.mxu2 }
 0x1be   :  { %v1579_v0 = vadd.f32 %v1347_v61, %v394_v4  ;;  %v472_v2 = vpop.xlane.xlu1 %471 }
 0x1bf   :  { %v528_v41 = vsub.f32 %v1427_v48, %v472_v2 }
 0x1c0   :  { %1937 = vst [vmem:[#allocation10_spill] sm:$0xff] %v1579_v0  ;;  %v1585_v9 = vsel %vm424_vm2, %v1579_v0, -inf }
 0x1c1   :  { %v1587_v7 = vpop.eup %1005  ;;  %v567_v12 = vmul.f32 1.442695, %v528_v41  ;;  %499 = vmax.xlane.f32.xlu0 %v1585_v9 }
 0x1c2   :  { %629 = vadd.xlane.f32.xlu2 %v1587_v7 }
 0x1c3   :  { %1007 = vpow2.f32 %v567_v12 }
 0x1c5   :  { %v397_v16 = vpop.f32.mrf.mxu2 }
 0x1c6   :  { %v1592_v19 = vadd.f32 %v1347_v61, %v397_v16  ;;  %v474_v20 = vpop.xlane.xlu2 %473 }
 0x1c7   :  { %v529_v48 = vsub.f32 %v1436_v55, %v474_v20 }
 0x1c8   :  { %1938 = vst [vmem:[#allocation11_spill] sm:$0xff] %v1592_v19  ;;  %v1598_v25 = vsel %vm424_vm2, %v1592_v19, -inf }
 0x1c9   :  { %v1600_v22 = vpop.eup %1007  ;;  %v569_v31 = vmul.f32 1.442695, %v529_v48  ;;  %501 = vmax.xlane.f32.xlu1 %v1598_v25 }
 0x1ca   :  { %631 = vadd.xlane.f32.xlu0 %v1600_v22 }
 0x1cb   :  { %1009 = vpow2.f32 %v569_v31 }
 0x1cd   :  { %v399_v32 = vpop.f32.mrf.mxu2 }
 0x1ce   :  { %v1605_v38 = vadd.f32 %v1347_v61, %v399_v32  ;;  %v476_v29 = vpop.xlane.xlu0 %475 }
 0x1cf   :  { %v530_v55 = vsub.f32 %v1447_v63, %v476_v29 }
 0x1d0   :  { %1939 = vst [vmem:[#allocation12_spill] sm:$0xff] %v1605_v38  ;;  %v1611_v44 = vsel %vm424_vm2, %v1605_v38, -inf }
 0x1d1   :  { %v1613_v45 = vpop.eup %1009  ;;  %v571_v51 = vmul.f32 1.442695, %v530_v55  ;;  %503 = vmax.xlane.f32.xlu2 %v1611_v44 }
 0x1d2   :  { %633 = vadd.xlane.f32.xlu1 %v1613_v45 }
 0x1d3   :  { %1011 = vpow2.f32 %v571_v51 }
 0x1d5   :  { %v402_v35 = vpop.f32.mrf.mxu2 }
 0x1d6   :  { %v1618_v58 = vadd.f32 %v1347_v61, %v402_v35  ;;  %v478_v4 = vpop.xlane.xlu1 %477 }
 0x1d7   :  { %v531_v63 = vsub.f32 %v1456_v10, %v478_v4 }
 0x1d8   :  { %1940 = vst [vmem:[#allocation13_spill] sm:$0xff] %v1618_v58  ;;  %v1624_v2 = vsel %vm424_vm2, %v1618_v58, -inf }
 0x1d9   :  { %v1626_v41 = vpop.eup %1011  ;;  %v573_v12 = vmul.f32 1.442695, %v531_v63  ;;  %505 = vmax.xlane.f32.xlu0 %v1624_v2 }
 0x1da   :  { %635 = vadd.xlane.f32.xlu2 %v1626_v41 }
 0x1db   :  { %1013 = vpow2.f32 %v573_v12 }
 0x1dd   :  { %v404_v16 = vpop.f32.mrf.mxu2 }
 0x1de   :  { %v1631_v20 = vadd.f32 %v1347_v61, %v404_v16  ;;  %v480_v4 = vpop.xlane.xlu2 %479 }
 0x1e0   :  { %1941 = vst [vmem:[#allocation14_spill] sm:$0xff] %v1631_v20  ;;  %v1636_v10 = vsel %vm424_vm2, %v1631_v20, -inf }
 0x1e1   :  { %v1638_v48 = vpop.eup %1013  ;;  %507 = vmax.xlane.f32.xlu1 %v1636_v10 }
 0x1e2   :  { %637 = vadd.xlane.f32.xlu0 %v1638_v48 }
 0x1e5   :  { %v407_v31 = vpop.f32.mrf.mxu2 }
 0x1e6   :  { %v1643_v32 = vadd.f32 %v1347_v61, %v407_v31  ;;  %v482_v16 = vpop.xlane.xlu0 %481 }
 0x1e8   :  { %1942 = vst [vmem:[#allocation15_spill] sm:$0xff] %v1643_v32  ;;  %v1648_v29 = vsel %vm424_vm2, %v1643_v32, -inf }
 0x1e9   :  { %509 = vmax.xlane.f32.xlu2 %v1648_v29 }
 0x1ed   :  { %v409_v55 = vpop.f32.mrf.mxu2 }
 0x1ee   :  { %v1652_v51 = vadd.f32 %v1347_v61, %v409_v55  ;;  %v533_v55 = vsub.f32 %v1476_v26, %v482_v16  ;;  %v484_v38 = vpop.xlane.xlu1 %483 }
 0x1f0   :  { %1943 = vst [vmem:[#allocation16_spill] sm:$0xff] %v1652_v51  ;;  %v1657_v35 = vsel %vm424_vm2, %v1652_v51, -inf  ;;  %v577_v20 = vmul.f32 1.442695, %v533_v55 }
 0x1f1   :  { %511 = vmax.xlane.f32.xlu0 %v1657_v35 }
 0x1f2   :  { %1015 = vpow2.f32 %v577_v20 }
 0x1f5   :  { %v412_v63 = vpop.f32.mrf.mxu2 }
 0x1f6   :  { %v1661_v12 = vadd.f32 %v1347_v61, %v412_v63  ;;  %v486_v32 = vpop.xlane.xlu2 %485 }
 0x1f8   :  { %1944 = vst [vmem:[#allocation17_spill] sm:$0xff] %v1661_v12  ;;  %v1666_v31 = vsel %vm424_vm2, %v1661_v12, -inf  ;;  %v534_v12 = vsub.f32 %v1487_v36, %v484_v38  ;;  %v1684_v37 = vpop.eup %1015  ;;  %v532_v36 = vsub.f32 %v1467_v17, %v480_v4 }
 0x1f9   :  { %513 = vmax.xlane.f32.xlu1 %v1666_v31 }
 0x1fa   :  { %v579_v55 = vmul.f32 1.442695, %v534_v12 }
 0x1fd   :  { %v414_v51 = vpop.f32.mrf.mxu2 }
 0x1fe   :  { %v1671_v58 = vadd.f32 %v1347_v61, %v414_v51  ;;  %v488_v19 = vpop.xlane.xlu0 %487 }
 0x1ff   :  { %v536_v26 = vsub.f32 %v1506_v52, %v488_v19 }
 0x200   :  { %1945 = vst [vmem:[#allocation18_spill] sm:$0xff] %v1671_v58  ;;  %v1676_v63 = vsel %vm424_vm2, %v1671_v58, -inf }
 0x201   :  { %515 = vmax.xlane.f32.xlu2 %v1676_v63  ;;  %v583_v49 = vmul.f32 1.442695, %v536_v26 }
 0x205   :  { %v417_v16 = vpop.f32.mrf.mxu2  ;;  %v618_v0 = vpop.xlane.xlu2 %617 }
 0x206   :  { %v1682_v51 = vadd.f32 %v1347_v61, %v417_v16  ;;  %1017 = vrcp.f32 %v618_v0  ;;  %v575_v16 = vmul.f32 1.442695, %v532_v36 }
 0x207   :  { %1019 = vpow2.f32 %v579_v55 }
 0x208   :  { %1946 = vst [vmem:[#allocation19_spill] sm:$0xff] %v1682_v51  ;;  %v1689_v58 = vsel %vm424_vm2, %v1682_v51, -inf  ;;  %1021 = vpow2.f32 %v583_v49 }
 0x209   :  { %517 = vmax.xlane.f32.xlu0 %v1689_v58  ;;  %641 = vadd.xlane.f32.xlu2 %v1684_v37 }
 0x20c   :  { %v1018_v52 = vpop.eup %1017  ;;  %v490_v19 = vpop.xlane.xlu1 %489 }
 0x20d   :  { %v713_v38 = vmul.f32 %v1018_v52, %v618_v0  ;;  %v537_v20 = vsub.f32 %v1520_v3, %v490_v19  ;;  %v419_v12 = vpop.f32.mrf.mxu2  ;;  %v620_v26 = vpop.xlane.xlu0 %619 }
 0x20e   :  { %v1696_v11 = vadd.f32 %v1347_v61, %v419_v12  ;;  %1023 = vrcp.f32 %v620_v26  ;;  %v1698_v42 = vpop.eup %1019  ;;  %v535_v61 = vsub.f32 %v1496_v46, %v486_v32 }
 0x20f   :  { %v745_v51 = vsub.f32 2.0, %v713_v38  ;;  %v585_v23 = vmul.f32 1.442695, %v537_v20  ;;  %v1705_v49 = vpop.eup %1021 }
 0x210   :  { %v1703_v17 = vsel %vm424_vm2, %v1696_v11, -inf }
 0x211   :  { %v777_v0 = vmul.f32 %v1018_v52, %v745_v51  ;;  %1025 = vpow2.f32 %v585_v23  ;;  %519 = vmax.xlane.f32.xlu1 %v1703_v17  ;;  %643 = vadd.xlane.f32.xlu0 %v1698_v42  ;;  %v581_v23 = vmul.f32 1.442695, %v535_v61 }
 0x212   :  { %1027 = vpow2.f32 %v575_v16  ;;  %647 = vadd.xlane.f32.xlu2 %v1705_v49 }
 0x213   :  { %v809_v3 = vmul.f32 %v1510_v57, %v777_v0 }
 0x214   :  { %v1024_v4 = vpop.eup %1023  ;;  %v492_v55 = vpop.xlane.xlu2 %491 }
 0x215   :  { %v841_v36 = vsel %vm424_vm2, %v809_v3, %v1351_v1  ;;  %v714_v19 = vmul.f32 %v1024_v4, %v620_v26  ;;  %v622_v51 = vpop.xlane.xlu1 %621  ;;  %v538_v57 = vsub.f32 %v1533_v13, %v492_v55 }
 0x216   :  { %873 = vst [vmem:[#allocation2] sm:$0xff] %v841_v36  ;;  %1029 = vrcp.f32 %v622_v51 }
 0x217   :  { %v1715_v52 = vpop.eup %1025  ;;  %v746_v38 = vsub.f32 2.0, %v714_v19  ;;  %1031 = vpow2.f32 %v581_v23  ;;  %v587_v3 = vmul.f32 1.442695, %v538_v57 }
 0x218   :  { %v1717_v20 = vpop.eup %1027 }
 0x219   :  { %v778_v46 = vmul.f32 %v1024_v4, %v746_v38  ;;  %639 = vadd.xlane.f32.xlu1 %v1717_v20  ;;  %649 = vadd.xlane.f32.xlu0 %v1715_v52 }
 0x21b   :  { %v810_v1 = vmul.f32 %v1522_v6, %v778_v46 }
 0x21c   :  { %v1030_v32 = vpop.eup %1029  ;;  %v494_v12 = vpop.xlane.xlu0 %493 }
 0x21d   :  { %v842_v26 = vsel %vm424_vm2, %v810_v1, %v1362_v8  ;;  %v715_v16 = vmul.f32 %v1030_v32, %v622_v51  ;;  %v539_v0 = vsub.f32 %v1546_v28, %v494_v12  ;;  %v624_v61 = vpop.xlane.xlu2 %623  ;;  %v1727_v19 = vpop.eup %1031 }
 0x21e   :  { %874 = vst [vmem:[#allocation2 + $0x8] sm:$0xff] %v842_v26  ;;  %1033 = vrcp.f32 %v624_v61 }
 0x21f   :  { %v747_v4 = vsub.f32 2.0, %v715_v16  ;;  %v589_v36 = vmul.f32 1.442695, %v539_v0 }
 0x221   :  { %v779_v13 = vmul.f32 %v1030_v32, %v747_v4  ;;  %1035 = vpow2.f32 %v589_v36  ;;  %645 = vadd.xlane.f32.xlu1 %v1727_v19 }
 0x222   :  { %1037 = vpow2.f32 %v587_v3 }
 0x223   :  { %v811_v6 = vmul.f32 %v1535_v18, %v779_v13 }
 0x224   :  { %v1034_v55 = vpop.eup %1033  ;;  %v496_v8 = vpop.xlane.xlu1 %495 }
 0x225   :  { %v843_v28 = vsel %vm424_vm2, %v811_v6, %v1371_v14  ;;  %v716_v51 = vmul.f32 %v1034_v55, %v624_v61  ;;  %v540_v23 = vsub.f32 %v1559_v40, %v496_v8  ;;  %v626_v38 = vpop.xlane.xlu0 %625 }
 0x226   :  { %875 = vst [vmem:[#allocation2 + $0x10] sm:$0xff] %v843_v28  ;;  %1039 = vrcp.f32 %v626_v38 }
 0x227   :  { %v1735_v46 = vpop.eup %1035  ;;  %v748_v57 = vsub.f32 2.0, %v716_v51  ;;  %v591_v1 = vmul.f32 1.442695, %v540_v23 }
 0x228   :  { %v1737_v32 = vpop.eup %1037  ;;  %653 = vadd.xlane.f32.xlu2 %v1735_v46 }
 0x229   :  { %v780_v18 = vmul.f32 %v1034_v55, %v748_v57  ;;  %1041 = vpow2.f32 %v591_v1  ;;  %651 = vadd.xlane.f32.xlu1 %v1737_v32 }
 0x22b   :  { %v812_v14 = vmul.f32 %v1548_v30, %v780_v18 }
 0x22c   :  { %v1040_v12 = vpop.eup %1039  ;;  %v498_v26 = vpop.xlane.xlu2 %497 }
 0x22d   :  { %v844_v40 = vsel %vm424_vm2, %v812_v14, %v1382_v21  ;;  %v717_v16 = vmul.f32 %v1040_v12, %v626_v38  ;;  %v541_v0 = vsub.f32 %v1572_v54, %v498_v26  ;;  %v628_v61 = vpop.xlane.xlu1 %627 }
 0x22e   :  { %876 = vst [vmem:[#allocation2 + $0x18] sm:$0xff] %v844_v40  ;;  %1043 = vrcp.f32 %v628_v61 }
 0x22f   :  { %v1746_v3 = vpop.eup %1041  ;;  %v749_v4 = vsub.f32 2.0, %v717_v16  ;;  %v593_v36 = vmul.f32 1.442695, %v541_v0 }
 0x230   :  { %655 = vadd.xlane.f32.xlu0 %v1746_v3 }
 0x231   :  { %v781_v13 = vmul.f32 %v1040_v12, %v749_v4  ;;  %1045 = vpow2.f32 %v593_v36 }
 0x233   :  { %v813_v30 = vmul.f32 %v1561_v43, %v781_v13 }
 0x234   :  { %v1044_v6 = vpop.eup %1043  ;;  %v500_v55 = vpop.xlane.xlu0 %499 }
 0x235   :  { %v845_v21 = vsel %vm424_vm2, %v813_v30, %v1391_v27  ;;  %v718_v54 = vmul.f32 %v1044_v6, %v628_v61  ;;  %v542_v8 = vsub.f32 %v1585_v9, %v500_v55  ;;  %v630_v28 = vpop.xlane.xlu2 %629 }
 0x236   :  { %877 = vst [vmem:[#allocation2 + $0x20] sm:$0xff] %v845_v21  ;;  %1047 = vrcp.f32 %v630_v28 }
 0x237   :  { %v1754_v51 = vpop.eup %1045  ;;  %v750_v23 = vsub.f32 2.0, %v718_v54  ;;  %v595_v38 = vmul.f32 1.442695, %v542_v8 }
 0x238   :  { %657 = vadd.xlane.f32.xlu1 %v1754_v51 }
 0x239   :  { %v782_v57 = vmul.f32 %v1044_v6, %v750_v23  ;;  %1049 = vpow2.f32 %v595_v38 }
 0x23b   :  { %v814_v43 = vmul.f32 %v1574_v56, %v782_v57 }
 0x23c   :  { %v1048_v1 = vpop.eup %1047  ;;  %v502_v18 = vpop.xlane.xlu1 %501 }
 0x23d   :  { %v846_v27 = vsel %vm424_vm2, %v814_v43, %v1402_v33  ;;  %v719_v9 = vmul.f32 %v1048_v1, %v630_v28  ;;  %v543_v14 = vsub.f32 %v1598_v25, %v502_v18  ;;  %v632_v12 = vpop.xlane.xlu0 %631 }
 0x23e   :  { %878 = vst [vmem:[#allocation2 + $0x28] sm:$0xff] %v846_v27  ;;  %1051 = vrcp.f32 %v632_v12 }
 0x23f   :  { %v1762_v26 = vpop.eup %1049  ;;  %v751_v40 = vsub.f32 2.0, %v719_v9  ;;  %v597_v16 = vmul.f32 1.442695, %v543_v14 }
 0x240   :  { %659 = vadd.xlane.f32.xlu2 %v1762_v26 }
 0x241   :  { %v783_v0 = vmul.f32 %v1048_v1, %v751_v40  ;;  %1053 = vpow2.f32 %v597_v16 }
 0x243   :  { %v815_v56 = vmul.f32 %v1587_v7, %v783_v0 }
 0x244   :  { %v1052_v61 = vpop.eup %1051  ;;  %v504_v4 = vpop.xlane.xlu2 %503 }
 0x245   :  { %v847_v33 = vsel %vm424_vm2, %v815_v56, %v1411_v39  ;;  %v720_v25 = vmul.f32 %v1052_v61, %v632_v12  ;;  %v544_v36 = vsub.f32 %v1611_v44, %v504_v4  ;;  %v634_v13 = vpop.xlane.xlu1 %633 }
 0x246   :  { %879 = vst [vmem:[#allocation2 + $0x30] sm:$0xff] %v847_v33  ;;  %1055 = vrcp.f32 %v634_v13 }
 0x247   :  { %v1770_v30 = vpop.eup %1053  ;;  %v752_v6 = vsub.f32 2.0, %v720_v25  ;;  %v599_v55 = vmul.f32 1.442695, %v544_v36 }
 0x248   :  { %661 = vadd.xlane.f32.xlu0 %v1770_v30 }
 0x249   :  { %v784_v21 = vmul.f32 %v1052_v61, %v752_v6  ;;  %1057 = vpow2.f32 %v599_v55 }
 0x24b   :  { %v816_v7 = vmul.f32 %v1600_v22, %v784_v21 }
 0x24c   :  { %v1056_v54 = vpop.eup %1055  ;;  %v506_v8 = vpop.xlane.xlu0 %505 }
 0x24d   :  { %v848_v39 = vsel %vm424_vm2, %v816_v7, %v1422_v47  ;;  %v721_v44 = vmul.f32 %v1056_v54, %v634_v13  ;;  %v545_v28 = vsub.f32 %v1624_v2, %v506_v8  ;;  %v636_v23 = vpop.xlane.xlu2 %635 }
 0x24e   :  { %880 = vst [vmem:[#allocation2 + $0x38] sm:$0xff] %v848_v39  ;;  %1059 = vrcp.f32 %v636_v23 }
 0x24f   :  { %v1778_v38 = vpop.eup %1057  ;;  %v753_v57 = vsub.f32 2.0, %v721_v44  ;;  %v601_v43 = vmul.f32 1.442695, %v545_v28 }
 0x250   :  { %663 = vadd.xlane.f32.xlu1 %v1778_v38 }
 0x251   :  { %v785_v1 = vmul.f32 %v1056_v54, %v753_v57  ;;  %1061 = vpow2.f32 %v601_v43 }
 0x253   :  { %v817_v22 = vmul.f32 %v1613_v45, %v785_v1 }
 0x254   :  { %v1060_v18 = vpop.eup %1059  ;;  %v508_v27 = vpop.xlane.xlu1 %507 }
 0x255   :  { %v849_v47 = vsel %vm424_vm2, %v817_v22, %v1431_v53  ;;  %v722_v2 = vmul.f32 %v1060_v18, %v636_v23  ;;  %v546_v9 = vsub.f32 %v1636_v10, %v508_v27  ;;  %v638_v14 = vpop.xlane.xlu0 %637 }
 0x256   :  { %881 = vst [vmem:[#allocation2 + $0x40] sm:$0xff] %v849_v47  ;;  %1063 = vrcp.f32 %v638_v14 }
 0x257   :  { %v1786_v12 = vpop.eup %1061  ;;  %v754_v40 = vsub.f32 2.0, %v722_v2  ;;  %v603_v16 = vmul.f32 1.442695, %v546_v9 }
 0x258   :  { %665 = vadd.xlane.f32.xlu2 %v1786_v12 }
 0x259   :  { %v786_v0 = vmul.f32 %v1060_v18, %v754_v40  ;;  %1065 = vpow2.f32 %v603_v16 }
 0x25b   :  { %v818_v45 = vmul.f32 %v1626_v41, %v786_v0 }
 0x25c   :  { %v1064_v56 = vpop.eup %1063  ;;  %v510_v61 = vpop.xlane.xlu2 %509 }
 0x25d   :  { %v850_v53 = vsel %vm424_vm2, %v818_v45, %v1442_v62  ;;  %v723_v10 = vmul.f32 %v1064_v56, %v638_v14  ;;  %v547_v4 = vsub.f32 %v1648_v29, %v510_v61 }
 0x25e   :  { %882 = vst [vmem:[#allocation2 + $0x48] sm:$0xff] %v850_v53 }
 0x25f   :  { %v1794_v33 = vpop.eup %1065  ;;  %v755_v25 = vsub.f32 2.0, %v723_v10  ;;  %v605_v36 = vmul.f32 1.442695, %v547_v4 }
 0x260   :  { %667 = vadd.xlane.f32.xlu0 %v1794_v33 }
 0x261   :  { %v787_v13 = vmul.f32 %v1064_v56, %v755_v25  ;;  %1067 = vpow2.f32 %v605_v36 }
 0x263   :  { %v819_v41 = vmul.f32 %v1638_v48, %v787_v13 }
 0x264   :  { %v512_v6 = vpop.xlane.xlu0 %511 }
 0x265   :  { %v851_v55 = vsel %vm424_vm2, %v819_v41, %v1451_v5  ;;  %v548_v62 = vsub.f32 %v1657_v35, %v512_v6 }
 0x266   :  { %883 = vst [vmem:[#allocation2 + $0x50] sm:$0xff] %v851_v55 }
 0x267   :  { %v1802_v29 = vpop.eup %1067  ;;  %v607_v21 = vmul.f32 1.442695, %v548_v62 }
 0x268   :  { %669 = vadd.xlane.f32.xlu1 %v1802_v29 }
 0x269   :  { %1069 = vpow2.f32 %v607_v21 }
 0x26c   :  { %v514_v7 = vpop.xlane.xlu1 %513 }
 0x26d   :  { %v549_v54 = vsub.f32 %v1666_v31, %v514_v7 }
 0x26f   :  { %v1806_v8 = vpop.eup %1069  ;;  %v609_v48 = vmul.f32 1.442695, %v549_v54 }
 0x270   :  { %671 = vadd.xlane.f32.xlu2 %v1806_v8 }
 0x271   :  { %1071 = vpow2.f32 %v609_v48 }
 0x274   :  { %v516_v39 = vpop.xlane.xlu2 %515 }
 0x275   :  { %v550_v5 = vsub.f32 %v1676_v63, %v516_v39 }
 0x277   :  { %v1810_v35 = vpop.eup %1071  ;;  %v611_v44 = vmul.f32 1.442695, %v550_v5 }
 0x278   :  { %673 = vadd.xlane.f32.xlu0 %v1810_v35 }
 0x279   :  { %1073 = vpow2.f32 %v611_v44 }
 0x27c   :  { %v642_v28 = vpop.xlane.xlu2 %641  ;;  %v518_v23 = vpop.xlane.xlu0 %517 }
 0x27d   :  { %1075 = vrcp.f32 %v642_v28  ;;  %v551_v31 = vsub.f32 %v1689_v58, %v518_v23 }
 0x27f   :  { %v1814_v57 = vpop.eup %1073  ;;  %v613_v43 = vmul.f32 1.442695, %v551_v31 }
 0x280   :  { %675 = vadd.xlane.f32.xlu1 %v1814_v57 }
 0x281   :  { %1077 = vpow2.f32 %v613_v43 }
 0x283   :  { %v1076_v1 = vpop.eup %1075 }
 0x284   :  { %v725_v22 = vmul.f32 %v1076_v1, %v642_v28  ;;  %v520_v63 = vpop.xlane.xlu1 %519  ;;  %v644_v18 = vpop.xlane.xlu0 %643 }
 0x285   :  { %v552_v27 = vsub.f32 %v1703_v17, %v520_v63  ;;  %v648_v47 = vpop.xlane.xlu2 %647  ;;  %1079 = vrcp.f32 %v644_v18 }
 0x286   :  { %v757_v2 = vsub.f32 2.0, %v725_v22  ;;  %1081 = vrcp.f32 %v648_v47 }
 0x287   :  { %v1818_v9 = vpop.eup %1077  ;;  %v615_v14 = vmul.f32 1.442695, %v552_v27 }
 0x288   :  { %v789_v58 = vmul.f32 %v1076_v1, %v757_v2  ;;  %677 = vadd.xlane.f32.xlu2 %v1818_v9 }
 0x289   :  { %1083 = vpow2.f32 %v615_v14 }
 0x28a   :  { %v821_v40 = vmul.f32 %v1684_v37, %v789_v58 }
 0x28b   :  { %v1080_v16 = vpop.eup %1079 }
 0x28c   :  { %v1082_v0 = vpop.eup %1081  ;;  %v853_v45 = vsel %vm424_vm2, %v821_v40, %v1471_v24  ;;  %v726_v17 = vmul.f32 %v1080_v16, %v644_v18  ;;  %v640_v56 = vpop.xlane.xlu1 %639 }
 0x28d   :  { %v650_v61 = vpop.xlane.xlu0 %649  ;;  %885 = vst [vmem:[#allocation2 + $0x60] sm:$0xff] %v853_v45  ;;  %v728_v53 = vmul.f32 %v1082_v0, %v648_v47  ;;  %1085 = vrcp.f32 %v640_v56  ;;  %v1947_v47 = vld [vmem:[#allocation5_spill] sm:$0xff] }
 0x28e   :  { %v758_v10 = vsub.f32 2.0, %v726_v17  ;;  %1087 = vrcp.f32 %v650_v61 }
 0x28f   :  { %v1825_v4 = vpop.eup %1083  ;;  %v760_v25 = vsub.f32 2.0, %v728_v53  ;;  %v1949_v53 = vld [vmem:[#allocation6_spill] sm:$0xff] }
 0x290   :  { %v790_v36 = vmul.f32 %v1080_v16, %v758_v10  ;;  %679 = vadd.xlane.f32.xlu0 %v1825_v4 }
 0x291   :  { %v792_v37 = vmul.f32 %v1082_v0, %v760_v25 }
 0x292   :  { %v822_v13 = vmul.f32 %v1698_v42, %v790_v36 }
 0x293   :  { %v1086_v41 = vpop.eup %1085  ;;  %v824_v24 = vmul.f32 %v1705_v49, %v792_v37 }
 0x294   :  { %v1088_v6 = vpop.eup %1087  ;;  %v854_v55 = vsel %vm424_vm2, %v822_v13, %v1482_v34  ;;  %v724_v62 = vmul.f32 %v1086_v41, %v640_v56  ;;  %v646_v21 = vpop.xlane.xlu1 %645  ;;  %v1950_v13 = vld [vmem:[#allocation8_spill] sm:$0xff] }
 0x295   :  { %v856_v7 = vsel %vm424_vm2, %v824_v24, %v1501_v50  ;;  %886 = vst [vmem:[#allocation2 + $0x68] sm:$0xff] %v854_v55  ;;  %v729_v54 = vmul.f32 %v1088_v6, %v650_v61  ;;  %1089 = vrcp.f32 %v646_v21 }
 0x296   :  { %888 = vst [vmem:[#allocation2 + $0x78] sm:$0xff] %v856_v7  ;;  %v756_v48 = vsub.f32 2.0, %v724_v62  ;;  %v1951_v7 = vld [vmem:[#allocation9_spill] sm:$0xff] }
 0x297   :  { %v761_v42 = vsub.f32 2.0, %v729_v54 }
 0x298   :  { %v788_v39 = vmul.f32 %v1086_v41, %v756_v48 }
 0x299   :  { %v793_v5 = vmul.f32 %v1088_v6, %v761_v42 }
 0x29a   :  { %v820_v49 = vmul.f32 %v1717_v20, %v788_v39 }
 0x29b   :  { %v1090_v44 = vpop.eup %1089  ;;  %v825_v28 = vmul.f32 %v1715_v52, %v793_v5  ;;  %v654_v34 = vpop.xlane.xlu2 %653 }
 0x29c   :  { %v852_v23 = vsel %vm424_vm2, %v820_v49, %v1462_v15  ;;  %v727_v31 = vmul.f32 %v1090_v44, %v646_v21  ;;  %1091 = vrcp.f32 %v654_v34  ;;  %v652_v50 = vpop.xlane.xlu1 %651 }
 0x29d   :  { %884 = vst [vmem:[#allocation2 + $0x58] sm:$0xff] %v852_v23  ;;  %v857_v43 = vsel %vm424_vm2, %v825_v28, %v1514_v60  ;;  %1093 = vrcp.f32 %v652_v50 }
 0x29e   :  { %889 = vst [vmem:[#allocation2 + $0x80] sm:$0xff] %v857_v43  ;;  %v759_v1 = vsub.f32 2.0, %v727_v31 }
 0x2a0   :  { %v791_v20 = vmul.f32 %v1090_v44, %v759_v1  ;;  %v1952_v44 = vld [vmem:[#allocation10_spill] sm:$0xff]  ;;  %v1953_v1 = vld [vmem:[#allocation11_spill] sm:$0xff] }
 0x2a2   :  { %v1092_v22 = vpop.eup %1091  ;;  %v823_v52 = vmul.f32 %v1727_v19, %v791_v20  ;;  %v1948_v19 = vld [vmem:[#allocation7_spill] sm:$0xff] }
 0x2a3   :  { %v1094_v63 = vpop.eup %1093  ;;  %v731_v18 = vmul.f32 %v1092_v22, %v654_v34  ;;  %v656_v27 = vpop.xlane.xlu0 %655 }
 0x2a4   :  { %v855_v15 = vsel %vm424_vm2, %v823_v52, %v1947_v47  ;;  %v730_v2 = vmul.f32 %v1094_v63, %v652_v50  ;;  %1095 = vrcp.f32 %v656_v27  ;;  %v1954_v47 = vld [vmem:[#allocation12_spill] sm:$0xff] }
 0x2a5   :  { %887 = vst [vmem:[#allocation2 + $0x70] sm:$0xff] %v855_v15  ;;  %v763_v14 = vsub.f32 2.0, %v731_v18 }
 0x2a6   :  { %v762_v58 = vsub.f32 2.0, %v730_v2 }
 0x2a7   :  { %v795_v60 = vmul.f32 %v1092_v22, %v763_v14 }
 0x2a8   :  { %v794_v40 = vmul.f32 %v1094_v63, %v762_v58 }
 0x2a9   :  { %v827_v16 = vmul.f32 %v1735_v46, %v795_v60 }
 0x2aa   :  { %v1096_v0 = vpop.eup %1095  ;;  %v826_v45 = vmul.f32 %v1737_v32, %v794_v40 }
 0x2ab   :  { %v859_v17 = vsel %vm424_vm2, %v827_v16, %v1948_v19  ;;  %v732_v56 = vmul.f32 %v1096_v0, %v656_v27  ;;  %v658_v61 = vpop.xlane.xlu1 %657  ;;  %v1955_v16 = vld [vmem:[#allocation13_spill] sm:$0xff] }
 0x2ac   :  { %891 = vst [vmem:[#allocation2 + $0x90] sm:$0xff] %v859_v17  ;;  %v858_v10 = vsel %vm424_vm2, %v826_v45, %v1949_v53  ;;  %1097 = vrcp.f32 %v658_v61  ;;  %v1956_v53 = vld [vmem:[#allocation14_spill] sm:$0xff] }
 0x2ad   :  { %890 = vst [vmem:[#allocation2 + $0x88] sm:$0xff] %v858_v10  ;;  %v764_v25 = vsub.f32 2.0, %v732_v56 }
 0x2af   :  { %v796_v36 = vmul.f32 %v1096_v0, %v764_v25 }
 0x2b1   :  { %v828_v46 = vmul.f32 %v1746_v3, %v796_v36 }
 0x2b2   :  { %v1098_v37 = vpop.eup %1097 }
 0x2b3   :  { %v860_v32 = vsel %vm424_vm2, %v828_v46, %v1950_v13  ;;  %v733_v41 = vmul.f32 %v1098_v37, %v658_v61  ;;  %v660_v24 = vpop.xlane.xlu2 %659 }
 0x2b4   :  { %892 = vst [vmem:[#allocation2 + $0x98] sm:$0xff] %v860_v32  ;;  %1099 = vrcp.f32 %v660_v24  ;;  %v1957_v32 = vld [vmem:[#allocation15_spill] sm:$0xff] }
 0x2b5   :  { %v765_v6 = vsub.f32 2.0, %v733_v41 }
 0x2b7   :  { %v797_v55 = vmul.f32 %v1098_v37, %v765_v6 }
 0x2b9   :  { %v829_v62 = vmul.f32 %v1754_v51, %v797_v55 }
 0x2ba   :  { %v1100_v21 = vpop.eup %1099 }
 0x2bb   :  { %v861_v54 = vsel %vm424_vm2, %v829_v62, %v1951_v7  ;;  %v734_v48 = vmul.f32 %v1100_v21, %v660_v24  ;;  %v662_v3 = vpop.xlane.xlu0 %661  ;;  %v1958_v7 = vld [vmem:[#allocation16_spill] sm:$0xff] }
 0x2bc   :  { %893 = vst [vmem:[#allocation2 + $0xa0] sm:$0xff] %v861_v54  ;;  %1101 = vrcp.f32 %v662_v3 }
 0x2bd   :  { %v766_v42 = vsub.f32 2.0, %v734_v48 }
 0x2bf   :  { %v798_v39 = vmul.f32 %v1100_v21, %v766_v42 }
 0x2c1   :  { %v830_v5 = vmul.f32 %v1762_v26, %v798_v39 }
 0x2c2   :  { %v1102_v49 = vpop.eup %1101 }
 0x2c3   :  { %v862_v28 = vsel %vm424_vm2, %v830_v5, %v1952_v44  ;;  %v735_v34 = vmul.f32 %v1102_v49, %v662_v3  ;;  %v664_v51 = vpop.xlane.xlu1 %663 }
 0x2c4   :  { %894 = vst [vmem:[#allocation2 + $0xa8] sm:$0xff] %v862_v28  ;;  %1103 = vrcp.f32 %v664_v51 }
 0x2c5   :  { %v767_v23 = vsub.f32 2.0, %v735_v34 }
 0x2c7   :  { %v799_v31 = vmul.f32 %v1102_v49, %v767_v23  ;;  %v1959_v49 = vld [vmem:[#allocation17_spill] sm:$0xff] }
 0x2c9   :  { %v831_v50 = vmul.f32 %v1770_v30, %v799_v31 }
 0x2ca   :  { %v1104_v43 = vpop.eup %1103 }
 0x2cb   :  { %v863_v20 = vsel %vm424_vm2, %v831_v50, %v1953_v1  ;;  %v736_v22 = vmul.f32 %v1104_v43, %v664_v51  ;;  %v666_v26 = vpop.xlane.xlu2 %665  ;;  %v1960_v50 = vld [vmem:[#allocation18_spill] sm:$0xff] }
 0x2cc   :  { %895 = vst [vmem:[#allocation2 + $0xb0] sm:$0xff] %v863_v20  ;;  %1105 = vrcp.f32 %v666_v26 }
 0x2cd   :  { %v768_v52 = vsub.f32 2.0, %v736_v22 }
 0x2cf   :  { %v800_v63 = vmul.f32 %v1104_v43, %v768_v52 }
 0x2d1   :  { %v832_v18 = vmul.f32 %v1778_v38, %v800_v63  ;;  %v1961_v63 = vld [vmem:[#allocation19_spill] sm:$0xff] }
 0x2d2   :  { %v1106_v27 = vpop.eup %1105 }
 0x2d3   :  { %v864_v15 = vsel %vm424_vm2, %v832_v18, %v1954_v47  ;;  %v737_v2 = vmul.f32 %v1106_v27, %v666_v26  ;;  %v668_v30 = vpop.xlane.xlu0 %667 }
 0x2d4   :  { %896 = vst [vmem:[#allocation2 + $0xb8] sm:$0xff] %v864_v15  ;;  %1107 = vrcp.f32 %v668_v30 }
 0x2d5   :  { %v769_v14 = vsub.f32 2.0, %v737_v2 }
 0x2d7   :  { %v801_v58 = vmul.f32 %v1106_v27, %v769_v14 }
 0x2d9   :  { %v833_v60 = vmul.f32 %v1786_v12, %v801_v58 }
 0x2da   :  { %v1108_v40 = vpop.eup %1107 }
 0x2db   :  { %v865_v0 = vsel %vm424_vm2, %v833_v60, %v1955_v16  ;;  %v738_v45 = vmul.f32 %v1108_v40, %v668_v30  ;;  %v670_v38 = vpop.xlane.xlu1 %669 }
 0x2dc   :  { %897 = vst [vmem:[#allocation2 + $0xc0] sm:$0xff] %v865_v0  ;;  %1109 = vrcp.f32 %v670_v38 }
 0x2dd   :  { %v770_v19 = vsub.f32 2.0, %v738_v45 }
 0x2df   :  { %v802_v17 = vmul.f32 %v1108_v40, %v770_v19 }
 0x2e1   :  { %v834_v56 = vmul.f32 %v1794_v33, %v802_v17 }
 0x2e2   :  { %v1110_v61 = vpop.eup %1109 }
 0x2e3   :  { %v866_v10 = vsel %vm424_vm2, %v834_v56, %v1956_v53  ;;  %v739_v25 = vmul.f32 %v1110_v61, %v670_v38  ;;  %v672_v12 = vpop.xlane.xlu2 %671 }
 0x2e4   :  { %898 = vst [vmem:[#allocation2 + $0xc8] sm:$0xff] %v866_v10  ;;  %1111 = vrcp.f32 %v672_v12 }
 0x2e5   :  { %v771_v36 = vsub.f32 2.0, %v739_v25 }
 0x2e7   :  { %v803_v46 = vmul.f32 %v1110_v61, %v771_v36 }
 0x2e9   :  { %v835_v37 = vmul.f32 %v1802_v29, %v803_v46 }
 0x2ea   :  { %v1112_v13 = vpop.eup %1111 }
 0x2eb   :  { %v867_v41 = vsel %vm424_vm2, %v835_v37, %v1957_v32  ;;  %v740_v24 = vmul.f32 %v1112_v13, %v672_v12  ;;  %v674_v33 = vpop.xlane.xlu0 %673 }
 0x2ec   :  { %899 = vst [vmem:[#allocation2 + $0xd0] sm:$0xff] %v867_v41  ;;  %1113 = vrcp.f32 %v674_v33 }
 0x2ed   :  { %v772_v6 = vsub.f32 2.0, %v740_v24 }
 0x2ef   :  { %v804_v55 = vmul.f32 %v1112_v13, %v772_v6 }
 0x2f1   :  { %v836_v62 = vmul.f32 %v1806_v8, %v804_v55 }
 0x2f2   :  { %v1114_v21 = vpop.eup %1113 }
 0x2f3   :  { %v868_v54 = vsel %vm424_vm2, %v836_v62, %v1958_v7  ;;  %v741_v48 = vmul.f32 %v1114_v21, %v674_v33  ;;  %v676_v29 = vpop.xlane.xlu1 %675 }
 0x2f4   :  { %900 = vst [vmem:[#allocation2 + $0xd8] sm:$0xff] %v868_v54  ;;  %1115 = vrcp.f32 %v676_v29 }
 0x2f5   :  { %v773_v3 = vsub.f32 2.0, %v741_v48 }
 0x2f7   :  { %v805_v42 = vmul.f32 %v1114_v21, %v773_v3 }
 0x2f9   :  { %v837_v39 = vmul.f32 %v1810_v35, %v805_v42 }
 0x2fa   :  { %v1116_v5 = vpop.eup %1115 }
 0x2fb   :  { %v869_v44 = vsel %vm424_vm2, %v837_v39, %v1959_v49  ;;  %v742_v28 = vmul.f32 %v1116_v5, %v676_v29  ;;  %v678_v8 = vpop.xlane.xlu2 %677 }
 0x2fc   :  { %901 = vst [vmem:[#allocation2 + $0xe0] sm:$0xff] %v869_v44  ;;  %1117 = vrcp.f32 %v678_v8 }
 0x2fd   :  { %v774_v34 = vsub.f32 2.0, %v742_v28 }
 0x2ff   :  { %v806_v51 = vmul.f32 %v1116_v5, %v774_v34 }
 0x301   :  { %v838_v23 = vmul.f32 %v1814_v57, %v806_v51 }
 0x302   :  { %v1118_v31 = vpop.eup %1117 }
 0x303   :  { %v870_v43 = vsel %vm424_vm2, %v838_v23, %v1960_v50  ;;  %v743_v1 = vmul.f32 %v1118_v31, %v678_v8  ;;  %v680_v35 = vpop.xlane.xlu0 %679 }
 0x304   :  { %902 = vst [vmem:[#allocation2 + $0xe8] sm:$0xff] %v870_v43  ;;  %1119 = vrcp.f32 %v680_v35 }
 0x305   :  { %v775_v20 = vsub.f32 2.0, %v743_v1 }
 0x307   :  { %v807_v22 = vmul.f32 %v1118_v31, %v775_v20 }
 0x309   :  { %v839_v26 = vmul.f32 %v1818_v9, %v807_v22 }
 0x30a   :  { %v1120_v52 = vpop.eup %1119 }
 0x30b   :  { %v871_v18 = vsel %vm424_vm2, %v839_v26, %v1961_v63  ;;  %v744_v27 = vmul.f32 %v1120_v52, %v680_v35 }
 0x30c   :  { %903 = vst [vmem:[#allocation2 + $0xf0] sm:$0xff] %v871_v18 }
 0x30d   :  { %v776_v57 = vsub.f32 2.0, %v744_v27 }
 0x30f   :  { %v808_v47 = vmul.f32 %v1120_v52, %v776_v57 }
 0x311   :  { %v840_v15 = vmul.f32 %v1825_v4, %v808_v47 }
 0x313   :  { %v872_v9 = vsel %vm424_vm2, %v840_v15, %v1696_v11 }
 0x314   :  { %904 = vst [vmem:[#allocation2 + $0xf8] sm:$0xff] %v872_v9 }
 0x315   :  { %917 = dma.vmem_to_hbm [thread:$0]  %s910_s23, 4096, %s912_s25, [#allocation3], %s1148_s1, %s1148_s1, %s1149_s26  }
 0x316   :  { %1145 = dma.done.wait [#allocation3], 4096  }
 0x317   :  { %1146 = vsyncadd [#allocation3], 4294963200 }
 0x318   :  { %922 = vsyncpa [#allocation3], 1 }

</bundles_post_ra>
